<compile_context>
chip_gen: v6e
topology: v6e:2x2x1
jax: 0.10.0
libtpu: 0.0.40
codegen_flags: <defaults>
</compile_context>

<pallas_src>
import math

import jax
import jax.numpy as jnp
from jax import lax
from jax.experimental import pallas as pl
from jax.experimental.pallas import tpu as pltpu


# ----------------------------------------------------------------------------
# Generation-aware VMEM budget and tile candidates
# ----------------------------------------------------------------------------
def _vmem_capacity_bytes():
    try:
        return int(pltpu.get_tpu_info().vmem_capacity_bytes)
    except Exception:
        return 128 * 1024 * 1024  # v5e / v6e default


_VMEM_PHYS = _vmem_capacity_bytes()
_BIG_VMEM = _VMEM_PHYS > 64 * 1024 * 1024            # v5e/v6e (128 MiB) vs v7x (64 MiB)
_VMEM_LIMIT = min((3 * _VMEM_PHYS) // 4, 96 * 1024 * 1024)

_LIN_TM = (512, 256, 128) if _BIG_VMEM else (256, 128)
_LIN_TN = (1024, 512, 256, 128) if _BIG_VMEM else (512, 256, 128)
_LIN_TK = _LIN_TN
_ATT_TQ = (512, 256, 128) if _BIG_VMEM else (128,)
_ATT_TK = (512, 256, 128) if _BIG_VMEM else (256, 128)


def _pick_tile(dim, candidates):
    """Largest candidate tile that divides `dim`; else the full dim."""
    for c in candidates:
        if dim >= c and dim % c == 0:
            return c
    return dim


def _tile_and_pad(dim, candidates):
    """Return (tile, padded_dim).

    Prefers a candidate that divides `dim`.  Small dims become a single block.
    Awkward large dims are padded up to a multiple of the smallest candidate
    (128) instead of silently becoming one huge VMEM-blowing block.
    """
    for c in candidates:
        if dim >= c and dim % c == 0:
            return c, dim
    smallest = candidates[-1]
    if dim <= smallest:
        return dim, dim
    pad = ((dim + smallest - 1) // smallest) * smallest
    return smallest, pad


# ----------------------------------------------------------------------------
# Tiled linear:  y = x @ W^T + b   (W^T is pre-computed and stored in params)
# ----------------------------------------------------------------------------
def _linear_kernel(x_ref, wt_ref, b_ref, o_ref, acc_ref):
    k = pl.program_id(2)

    @pl.when(k == 0)
    def _():
        acc_ref[...] = jnp.zeros_like(acc_ref)

    acc_ref[...] += jnp.dot(x_ref[...], wt_ref[...],
                            preferred_element_type=jnp.float32)

    @pl.when(k == pl.num_programs(2) - 1)
    def _():
        o_ref[...] = (acc_ref[...] + b_ref[...]).astype(o_ref.dtype)


def linear_pallas(x, wt, b):
    """x:(M,K) @ wt:(K,N) + b:(N,) -> (M,N), tiled + pipelined.

    Rows (M) are padded to a 128 multiple for awkward sequence lengths and the
    padding is sliced off afterwards (safe: row-independent matmul).
    """
    M, K = x.shape
    N = wt.shape[1]
    tm, m_pad = _tile_and_pad(M, _LIN_TM)
    tn = _pick_tile(N, _LIN_TN)
    tk = _pick_tile(K, _LIN_TK)
    if m_pad != M:
        x = jnp.pad(x, ((0, m_pad - M), (0, 0)))
    b2 = b.reshape(1, N)

    out = pl.pallas_call(
        _linear_kernel,
        out_shape=jax.ShapeDtypeStruct((m_pad, N), x.dtype),
        grid_spec=pltpu.PrefetchScalarGridSpec(
            num_scalar_prefetch=0,
            grid=(m_pad // tm, N // tn, K // tk),
            in_specs=[
                pl.BlockSpec((tm, tk), lambda i, j, k: (i, k)),
                pl.BlockSpec((tk, tn), lambda i, j, k: (k, j)),
                pl.BlockSpec((1, tn), lambda i, j, k: (0, j)),
            ],
            out_specs=pl.BlockSpec((tm, tn), lambda i, j, k: (i, j)),
            scratch_shapes=[pltpu.VMEM((tm, tn), jnp.float32)]),
        compiler_params=pltpu.CompilerParams(
            dimension_semantics=("parallel", "parallel", "arbitrary"),
            vmem_limit_bytes=_VMEM_LIMIT),
    )(x, wt, b2)
    return out[:M] if m_pad != M else out


# ----------------------------------------------------------------------------
# Flash-style multi-head attention, heads packed along d_model.
#   q:(B,Sq,*)  k,v:(B,Sk,*)  ->  ctx:(B,Sq,D)
# The q/k/v arrays may all alias one fused (B,S,3D) slab; the BlockSpec
# index_map selects the D-wide block along the last axis (q_blk/k_blk/v_blk).
# ----------------------------------------------------------------------------
def _make_flash_attn_kernel(num_heads, d_k, kv_len=None):
    """kv_len: true (unpadded) key count, or None when no tail masking is needed."""

    def kernel(q_ref, k_ref, v_ref, o_ref, m_ref, l_ref, acc_ref):
        kv_idx = pl.program_id(2)

        @pl.when(kv_idx == 0)
        def _init():
            m_ref[...] = jnp.full_like(m_ref, -jnp.inf)
            l_ref[...] = jnp.zeros_like(l_ref)
            acc_ref[...] = jnp.zeros_like(acc_ref)

        tq = q_ref.shape[1]
        tk = k_ref.shape[1]
        # 1/sqrt(d_k) is folded into the Q projection weights (prepare_params).
        q = q_ref[0].reshape(tq, num_heads, d_k)   # (tq, H, dk)
        k = k_ref[0].reshape(tk, num_heads, d_k)   # (tk, H, dk)
        v = v_ref[0].reshape(tk, num_heads, d_k)   # (tk, H, dk)

        # All heads in ONE batched MXU contraction: 'qhd,khd->hqk'.
        s = lax.dot_general(q, k, (((2,), (2,)), ((1,), (1,))),
                            preferred_element_type=jnp.float32)   # (H, tq, tk)

        if kv_len is not None:
            # Mask padded key tail (padding keeps pipelined 128-tiles legal).
            kpos = kv_idx * tk + lax.broadcasted_iota(jnp.int32, (1, 1, tk), 2)
            s = jnp.where(kpos < kv_len, s, -1e30)

        m_prev = m_ref[...]                                       # (H, tq, 1)
        m_new = jnp.maximum(m_prev, jnp.max(s, axis=-1, keepdims=True))
        alpha = jnp.exp(m_prev - m_new)
        p = jnp.exp(s - m_new)                                    # (H, tq, tk) f32
        l_ref[...] = alpha * l_ref[...] + jnp.sum(p, axis=-1, keepdims=True)
        # 'hqk,khd->hqd'
        pv = lax.dot_general(p.astype(v.dtype), v, (((2,), (0,)), ((0,), (1,))),
                             preferred_element_type=jnp.float32)  # (H, tq, dk)
        acc_ref[...] = alpha * acc_ref[...] + pv
        m_ref[...] = m_new

        @pl.when(kv_idx == pl.num_programs(2) - 1)
        def _finalize():
            l = l_ref[...]
            inv = pl.reciprocal(l, approx=True)                   # EUP slot
            inv = inv * (2.0 - l * inv)                           # 1 Newton step
            ctx = acc_ref[...] * inv                              # (H, tq, dk)
            # One relayout + one lane-dense (tq, D) store in (B,S,D) layout.
            o_ref[0] = jnp.swapaxes(ctx, 0, 1).reshape(
                tq, num_heads * d_k).astype(o_ref.dtype)

    return kernel


def attention_pallas(q, k, v, num_heads, d_model, q_blk=0, k_blk=0, v_blk=0):
    B, Sq, _ = q.shape
    Sk = k.shape[1]
    D = d_model
    assert D % num_heads == 0
    d_k = D // num_heads

    tq, sq_pad = _tile_and_pad(Sq, _ATT_TQ)
    tk, sk_pad = _tile_and_pad(Sk, _ATT_TK)

    # v7x megacore: keep the parallel grid extent >= 2 so both TCs have work.
    if B * (sq_pad // tq) < 2 and tq > 128 and tq % 2 == 0:
        tq //= 2

    # Pad awkward sequence lengths (padded query rows are sliced off below;
    # padded keys are masked inside the kernel).  Aliased inputs stay aliased.
    if sq_pad != Sq or sk_pad != Sk:
        q_p = jnp.pad(q, ((0, 0), (0, sq_pad - Sq), (0, 0))) if sq_pad != Sq else q
        if k is q and sk_pad == sq_pad:
            k_p = q_p
        else:
            k_p = jnp.pad(k, ((0, 0), (0, sk_pad - Sk), (0, 0))) if sk_pad != Sk else k
        if v is k:
            v_p = k_p
        elif v is q and sk_pad == sq_pad:
            v_p = q_p
        else:
            v_p = jnp.pad(v, ((0, 0), (0, sk_pad - Sk), (0, 0))) if sk_pad != Sk else v
        q, k, v = q_p, k_p, v_p

    kv_len = Sk if sk_pad != Sk else None

    q_spec = pl.BlockSpec((1, tq, D), lambda b, qi, ki: (b, qi, q_blk))
    k_spec = pl.BlockSpec((1, tk, D), lambda b, qi, ki: (b, ki, k_blk))
    v_spec = pl.BlockSpec((1, tk, D), lambda b, qi, ki: (b, ki, v_blk))
    o_spec = pl.BlockSpec((1, tq, D), lambda b, qi, ki: (b, qi, 0))

    out = pl.pallas_call(
        _make_flash_attn_kernel(num_heads, d_k, kv_len),
        out_shape=jax.ShapeDtypeStruct((B, sq_pad, D), q.dtype),
        grid_spec=pltpu.PrefetchScalarGridSpec(
            num_scalar_prefetch=0,
            grid=(B, sq_pad // tq, sk_pad // tk),
            in_specs=[q_spec, k_spec, v_spec],
            out_specs=o_spec,
            scratch_shapes=[
                pltpu.VMEM((num_heads, tq, 1), jnp.float32),     # m (running max)
                pltpu.VMEM((num_heads, tq, 1), jnp.float32),     # l (running denom)
                pltpu.VMEM((num_heads, tq, d_k), jnp.float32),   # acc
            ]),
        compiler_params=pltpu.CompilerParams(
            dimension_semantics=("parallel", "parallel", "arbitrary"),
            vmem_limit_bytes=_VMEM_LIMIT),
    )(q, k, v)
    return out[:, :Sq, :] if sq_pad != Sq else out


# ----------------------------------------------------------------------------
# MultiHeadedAttention forward (glue)
# ----------------------------------------------------------------------------
def multi_headed_attention(params, query, key, value, h, mask=None):
    """Mirrors MultiHeadedAttention.forward with mask=None, eval-mode dropout."""
    if mask is not None:
        raise NotImplementedError  # TODO(synk): masked attention (mask != None path)
    B, Sq, D = query.shape

    if (query is key) and (key is value) and D % 128 == 0:
        # Self-attention, lane-aligned d_model: ONE fused (D,3D) projection and
        # the (B,S,3D) slab feeds the attention kernel directly (last-axis
        # block 0/1/2) -- no q/k/v slice copies through HBM.
        qkv = linear_pallas(query.reshape(B * Sq, D),
                            params["w_qkv_fused_t"], params["b_qkv_fused"])
        qkv = qkv.reshape(B, Sq, 3 * D)
        ctx = attention_pallas(qkv, qkv, qkv, h, D, q_blk=0, k_blk=1, v_blk=2)
    else:
        # Separate projections (no jnp.stack round-trip through HBM).
        q = linear_pallas(query.reshape(-1, D), params["w_q_t"],
                          params["b_q"]).reshape(query.shape)
        k = linear_pallas(key.reshape(-1, D), params["w_k_t"],
                          params["b_k"]).reshape(key.shape)
        v = linear_pallas(value.reshape(-1, D), params["w_v_t"],
                          params["b_v"]).reshape(value.shape)
        ctx = attention_pallas(q, k, v, h, D)

    # TODO(synk): training-mode dropout on p_attn (identity / inference path here).
    out = linear_pallas(ctx.reshape(B * Sq, D), params["w_o_t"], params["b_o"])
    return out.reshape(B, Sq, D)


# ----------------------------------------------------------------------------
# Params (torch.nn.Linear-style init) + one-time weight prep
# (pre-transpose, fuse QKV, fold 1/sqrt(d_k) into the Q projection)
# ----------------------------------------------------------------------------
def init_params(key, d_model):
    bound = 1.0 / math.sqrt(d_model)
    names = ["q", "k", "v", "o"]
    keys = jax.random.split(key, 2 * len(names))
    raw = {}
    for i, n in enumerate(names):
        raw[f"w_{n}"] = jax.random.uniform(
            keys[2 * i], (d_model, d_model), jnp.float32, -bound, bound)
        raw[f"b_{n}"] = jax.random.uniform(
            keys[2 * i + 1], (d_model,), jnp.float32, -bound, bound)
    return raw


def prepare_params(raw, h):
    """Pre-transpose / fuse weights ONCE; fold 1/sqrt(d_k) into Q (f32, exact)."""
    D = raw["w_q"].shape[0]
    d_k = D // h
    scale = 1.0 / math.sqrt(d_k)

    wq_t = raw["w_q"].T * scale
    bq = raw["b_q"] * scale
    wk_t, wv_t = raw["w_k"].T, raw["w_v"].T

    p = {}
    p["w_qkv_fused_t"] = jnp.concatenate([wq_t, wk_t, wv_t], axis=1)     # (D, 3D)
    p["b_qkv_fused"] = jnp.concatenate([bq, raw["b_k"], raw["b_v"]])     # (3D,)
    p["w_q_t"], p["b_q"] = wq_t, bq
    p["w_k_t"], p["b_k"] = wk_t, raw["b_k"]
    p["w_v_t"], p["b_v"] = wv_t, raw["b_v"]
    p["w_o_t"], p["b_o"] = raw["w_o"].T, raw["b_o"]
    return p


# Pure-JAX reference for verification (uses unmodified raw weights).
def reference(raw, query, key, value, h):
    B, Sq, D = query.shape
    d_k = D // h

    def lin(x, w, b):
        return x @ w.T + b

    def split(x):
        b, s, _ = x.shape
        return x.reshape(b, s, h, d_k).transpose(0, 2, 1, 3)

    q = split(lin(query, raw["w_q"], raw["b_q"]))
    k = split(lin(key, raw["w_k"], raw["b_k"]))
    v = split(lin(value, raw["w_v"], raw["b_v"]))
    s = jnp.einsum("bhqd,bhkd->bhqk", q, k) / math.sqrt(d_k)
    p = jax.nn.softmax(s, axis=-1)
    ctx = jnp.einsum("bhqk,bhkd->bhqd", p, v)
    ctx = ctx.transpose(0, 2, 1, 3).reshape(B, Sq, D)
    return lin(ctx, raw["w_o"], raw["b_o"])


if __name__ == "__main__":
    # Small shapes; d_model=128 keeps the fused-QKV slab path lane-aligned.
    B, S, D, H = 2, 8, 128, 4   # batch, seq, d_model, heads (d_k = 32)

    root = jax.random.PRNGKey(0)
    k_p, k_q, k_k, k_v, k_x = jax.random.split(root, 5)
    raw = init_params(k_p, D)
    params = prepare_params(raw, H)
    query = jax.random.normal(k_q, (B, S, D), jnp.float32)
    key_x = jax.random.normal(k_k, (B, S, D), jnp.float32)
    value = jax.random.normal(k_v, (B, S, D), jnp.float32)

    # Path 1: distinct q/k/v inputs -> separate projections.
    out = multi_headed_attention(params, query, key_x, value, H)
    out = jax.block_until_ready(out)
    ref = reference(raw, query, key_x, value, H)
    assert out.shape == (B, S, D)
    assert jnp.allclose(out, ref, atol=2e-3, rtol=2e-3), "mismatch vs reference (cross)"

    # Path 2: self-attention -> fused QKV projection feeding attention directly.
    out_self = multi_headed_attention(params, query, query, query, H)
    out_self = jax.block_until_ready(out_self)
    ref_self = reference(raw, query, query, query, H)
    assert jnp.allclose(out_self, ref_self, atol=2e-3, rtol=2e-3), \
        "mismatch vs reference (self)"

    # Path 3: awkward (non-128-multiple) sequence length -> row/seq padding +
    # in-kernel key-tail masking guard path.
    x_odd = jax.random.normal(k_x, (1, 200, D), jnp.float32)
    out_odd = multi_headed_attention(params, x_odd, x_odd, x_odd, H)
    out_odd = jax.block_until_ready(out_odd)
    ref_odd = reference(raw, x_odd, x_odd, x_odd, H)
    assert out_odd.shape == (1, 200, D)
    assert jnp.allclose(out_odd, ref_odd, atol=2e-3, rtol=2e-3), \
        "mismatch vs reference (padded/masked)"

    print("KERNEL_OK")
</pallas_src>

<mosaic_0001>
module attributes {stable_mosaic.version = 11 : i64} {
  func.func @_linear_kernel(%arg0: i32, %arg1: i32, %arg2: i32, %arg3: memref<16x128xf32, #tpu.memory_space<vmem>>, %arg4: memref<128x128xf32, #tpu.memory_space<vmem>>, %arg5: memref<1x128xf32, #tpu.memory_space<vmem>>, %arg6: memref<16x128xf32, #tpu.memory_space<vmem>>, %arg7: memref<16x128xf32, #tpu.memory_space<vmem>>) attributes {dimension_semantics = [#tpu.dimension_semantics<parallel>, #tpu.dimension_semantics<parallel>, #tpu.dimension_semantics<arbitrary>], iteration_bounds = array<i64: 1, 1, 1>, scalar_prefetch = 0 : i64, scratch_operands = 1 : i64, tpu.core_type = #tpu.core_type<tc>, window_params = [{transform_indices = @transform_0, window_bounds = array<i64: 16, 128>}, {transform_indices = @transform_1, window_bounds = array<i64: 128, 128>}, {transform_indices = @transform_2, window_bounds = array<i64: 1, 128>}, {transform_indices = @transform_3, window_bounds = array<i64: 16, 128>}]} {
    %c0_i32 = arith.constant 0 : i32
    %0 = arith.cmpi eq, %arg2, %c0_i32 : i32
    %1 = arith.extui %0 : i1 to i32
    %c0_i32_0 = arith.constant 0 : i32
    %2 = arith.cmpi ne, %1, %c0_i32_0 : i32
    scf.if %2 {
      %cst_10 = arith.constant 0.000000e+00 : f32
      %12 = vector.broadcast %cst_10 : f32 to vector<16x128xf32>
      %c0_11 = arith.constant 0 : index
      %c0_12 = arith.constant 0 : index
      %13 = vector.load %arg7[%c0_11, %c0_12] : memref<16x128xf32, #tpu.memory_space<vmem>>, vector<16x128xf32>
      tpu.vector_store %arg7[%c0_11, %c0_12], %12 {strides = array<i32>} : memref<16x128xf32, #tpu.memory_space<vmem>>, vector<16x128xf32>,
    } else {
    }
    %c0 = arith.constant 0 : index
    %c0_1 = arith.constant 0 : index
    %3 = vector.load %arg7[%c0, %c0_1] : memref<16x128xf32, #tpu.memory_space<vmem>>, vector<16x128xf32>
    %c0_2 = arith.constant 0 : index
    %c0_3 = arith.constant 0 : index
    %4 = vector.load %arg3[%c0_2, %c0_3] : memref<16x128xf32, #tpu.memory_space<vmem>>, vector<16x128xf32>
    %c0_4 = arith.constant 0 : index
    %c0_5 = arith.constant 0 : index
    %5 = vector.load %arg4[%c0_4, %c0_5] : memref<128x128xf32, #tpu.memory_space<vmem>>, vector<128x128xf32>
    %cst = arith.constant dense<0.000000e+00> : vector<16x128xf32>
    %6 = tpu.matmul %4, %5, %cst {dimension_numbers = #tpu.dot_dimension_numbers<[1], [0], [0], [1], [0, 0, 1, 1], [], []>} : vector<16x128xf32>, vector<128x128xf32>, vector<16x128xf32> -> vector<16x128xf32>
    %7 = arith.addf %3, %6 : vector<16x128xf32>
    %c0_6 = arith.constant 0 : index
    %c0_7 = arith.constant 0 : index
    %8 = vector.load %arg7[%c0_6, %c0_7] : memref<16x128xf32, #tpu.memory_space<vmem>>, vector<16x128xf32>
    tpu.vector_store %arg7[%c0_6, %c0_7], %7 {strides = array<i32>} : memref<16x128xf32, #tpu.memory_space<vmem>>, vector<16x128xf32>,
    %c0_i32_8 = arith.constant 0 : i32
    %9 = arith.cmpi eq, %arg2, %c0_i32_8 : i32
    %10 = arith.extui %9 : i1 to i32
    %c0_i32_9 = arith.constant 0 : i32
    %11 = arith.cmpi ne, %10, %c0_i32_9 : i32
    scf.if %11 {
      %c0_10 = arith.constant 0 : index
      %c0_11 = arith.constant 0 : index
      %12 = vector.load %arg7[%c0_10, %c0_11] : memref<16x128xf32, #tpu.memory_space<vmem>>, vector<16x128xf32>
      %c0_12 = arith.constant 0 : index
      %c0_13 = arith.constant 0 : index
      %13 = vector.load %arg5[%c0_12, %c0_13] : memref<1x128xf32, #tpu.memory_space<vmem>>, vector<1x128xf32>
      %14 = vector.broadcast %13 : vector<1x128xf32> to vector<16x128xf32>
      %15 = arith.addf %12, %14 : vector<16x128xf32>
      %c0_14 = arith.constant 0 : index
      %c0_15 = arith.constant 0 : index
      %16 = vector.load %arg6[%c0_14, %c0_15] : memref<16x128xf32, #tpu.memory_space<vmem>>, vector<16x128xf32>
      tpu.vector_store %arg6[%c0_14, %c0_15], %15 {strides = array<i32>} : memref<16x128xf32, #tpu.memory_space<vmem>>, vector<16x128xf32>,
    } else {
    }
    return
  }
  func.func @transform_0(%arg0: i32, %arg1: i32, %arg2: i32) -> (i32, i32) {
    %c0_i32 = arith.constant 0 : i32
    return %arg0, %arg2 : i32, i32
  }
  func.func @transform_1(%arg0: i32, %arg1: i32, %arg2: i32) -> (i32, i32) {
    %c0_i32 = arith.constant 0 : i32
    return %arg2, %arg1 : i32, i32
  }
  func.func @transform_2(%arg0: i32, %arg1: i32, %arg2: i32) -> (i32, i32) {
    %c0_i32 = arith.constant 0 : i32
    %c0_i32_0 = arith.constant 0 : i32
    return %c0_i32, %arg1 : i32, i32
  }
  func.func @transform_3(%arg0: i32, %arg1: i32, %arg2: i32) -> (i32, i32) {
    %c0_i32 = arith.constant 0 : i32
    return %arg0, %arg1 : i32, i32
  }
}

</mosaic_0001>

<bundles_post_ra>
// kernel: tpu_custom_call.1
= control target key start
LH: loop header
LB: loop body
LE: loop exit
PB: predicated region body
PF: predicated region fallthrough
CT: control target
= control target key end

     0   :  { %8 = vsyncpa [#allocation4], 0  ;;  %s353_s0 = inlined_call_operand.hbm [shape: f32[16,128], index: 0, kind: input, shape index: {}]   ;;  %s354_s1 = inlined_call_operand.hbm [shape: f32[128,128], index: 1, kind: input, shape index: {}]   ;;  %s355_s2 = inlined_call_operand.vmem [shape: f32[1,128], index: 2, kind: input, shape index: {}]   ;;  %s356_s3 = inlined_call_operand.hbm [shape: f32[16,128], index: 3, kind: output, shape index: {}]  }
   0x1   :  { %9 = vsyncpa [#allocation7], 0 }
   0x2   :  { %10 = vsyncpa [#allocation5], 0  ;;  %s307_s12 = smov [#allocation3]  }
   0x3   :  { %s16_s13 = sshll.u32 %s307_s12, 4  ;;  %s17_s13 = int_to_ptr.vmem [resolvable:$true] %s16_s13 }
   0x4   :  { %s249_s14 = scalar_lea.vmem %s17_s13, 256  ;;  %p254_p1 = scmp.lt.s32.totalorder %s17_s13, %s17_s13 }
   0x5   :  { %p250_p0 = scmp.ne.s32.totalorder %s17_s13, %s249_s14  ;;  %p255_p2 = scmp.lt.s32.totalorder %s249_s14, %s249_s14 }
   0x7   :  { %p256_p3 = por %p255_p2, %p254_p1 }
   0x9   :  { %p257_p4 = pnand %p256_p3, %p250_p0 }
   0xb   :  { %260 = shalt.err (!%p257_p4)
}
   0xc   :  { %s308_s15 = smov 128   ;;  %s309_s16 = smov 8  }
   0xd   :  { %22 = dma.hbm_to_vmem [thread:$0]  %s353_s0, 256, %s17_s13, [#allocation4], %s308_s15, %s308_s15, %s309_s16  }
   0xe   :  { %s310_s19 = smov [#allocation6]  }
   0xf   :  { %s28_s20 = sshll.u32 %s310_s19, 4  ;;  %s29_s20 = int_to_ptr.vmem [resolvable:$true] %s28_s20 }
  0x10   :  { %s269_s21 = scalar_lea.vmem %s29_s20, 2048  ;;  %p274_p6 = scmp.lt.s32.totalorder %s29_s20, %s29_s20 }
  0x11   :  { %p270_p5 = scmp.ne.s32.totalorder %s29_s20, %s269_s21  ;;  %p275_p7 = scmp.lt.s32.totalorder %s269_s21, %s269_s21 }
  0x13   :  { %p276_p8 = por %p275_p7, %p274_p6 }
  0x15   :  { %p277_p9 = pnand %p276_p8, %p270_p5 }
  0x17   :  { %280 = shalt.err (!%p277_p9)
}
  0x18   :  { %34 = dma.hbm_to_vmem [thread:$0]  %s354_s1, 2048, %s29_s20, [#allocation7], %s308_s15, %s308_s15, %s309_s16  }
  0x19   :  { %301 = dma.done.wait [#allocation4], 256  }
  0x1a   :  { %302 = vsyncadd [#allocation4], 4294967040 }
  0x1b   :  { %303 = dma.done.wait [#allocation7], 2048  }
  0x1c   :  { %304 = vsyncadd [#allocation7], 4294965248  ;;  %v68_v0 = vld [vmem:[#allocation6 + $0x78] sm:$0xff]  ;;  %v67_v1 = vld [vmem:[#allocation6 + $0x70] sm:$0xff]  ;;  %s311_s24 = smov [#allocation8]  }
  0x1d   :  { %201 = vmatprep.subr.mxu0 %v68_v0  ;;  %v66_v2 = vld [vmem:[#allocation6 + $0x68] sm:$0xff]  ;;  %v65_v3 = vld [vmem:[#allocation6 + $0x60] sm:$0xff]  ;;  %v51_v4 = vld [vmem:[#allocation3] sm:$0xff]  ;;  %s169_s25 = sshll.u32 %s311_s24, 4  ;;  %s170_s25 = int_to_ptr.vmem [resolvable:$true] %s169_s25 }
  0x1e   :  { %202 = vmatpush3.msra.mxu0 %v68_v0  ;;  %v64_v5 = vld [vmem:[#allocation6 + $0x58] sm:$0xff]  ;;  %233 = vmatprep.mubr.f32.mxu0 %v51_v4  ;;  %v63_v6 = vld [vmem:[#allocation6 + $0x50] sm:$0xff]  ;;  %v62_v7 = vld [vmem:[#allocation6 + $0x48] sm:$0xff]  ;;  %s281_s26 = scalar_lea.vmem %s170_s25, 256  ;;  %p286_p11 = scmp.lt.s32.totalorder %s170_s25, %s170_s25 }
  0x1f   :  { %203 = vmatprep.subr.mxu0 %v67_v1  ;;  %v61_v8 = vld [vmem:[#allocation6 + $0x40] sm:$0xff]  ;;  %v60_v9 = vld [vmem:[#allocation6 + $0x38] sm:$0xff]  ;;  %v59_v10 = vld [vmem:[#allocation6 + $0x30] sm:$0xff]  ;;  %p282_p10 = scmp.ne.s32.totalorder %s170_s25, %s281_s26  ;;  %p287_p12 = scmp.lt.s32.totalorder %s281_s26, %s281_s26 }
  0x20   :  { %204 = vmatpush3.msra.mxu0 %v67_v1  ;;  %v58_v11 = vld [vmem:[#allocation6 + $0x28] sm:$0xff]  ;;  %v57_v12 = vld [vmem:[#allocation6 + $0x20] sm:$0xff]  ;;  %v56_v13 = vld [vmem:[#allocation6 + $0x18] sm:$0xff] }
  0x21   :  { %205 = vmatprep.subr.mxu0 %v66_v2  ;;  %v55_v14 = vld [vmem:[#allocation6 + $0x10] sm:$0xff]  ;;  %v54_v15 = vld [vmem:[#allocation6 + $0x8] sm:$0xff]  ;;  %v53_v16 = vld [vmem:[#allocation6] sm:$0xff]  ;;  %p288_p13 = por %p287_p12, %p286_p11 }
  0x22   :  { %206 = vmatpush3.msra.mxu0 %v66_v2  ;;  %v52_v17 = vld [vmem:[#allocation3 + $0x8] sm:$0xff]  ;;  %v182_v18 = vld [vmem:[%s355_s2] ss:$0 sm:$0xff] }
  0x23   :  { %207 = vmatprep.subr.mxu0 %v65_v3  ;;  %p289_p0 = pnand %p288_p13, %p282_p10 }
  0x24   :  { %208 = vmatpush3.msra.mxu0 %v65_v3 }
  0x25   :  { %209 = vmatprep.subr.mxu0 %v64_v5 }
  0x26   :  { %210 = vmatpush3.msra.mxu0 %v64_v5 }
  0x27   :  { %211 = vmatprep.subr.mxu0 %v63_v6 }
  0x28   :  { %212 = vmatpush3.msra.mxu0 %v63_v6 }
  0x29   :  { %213 = vmatprep.subr.mxu0 %v62_v7 }
  0x2a   :  { %214 = vmatpush3.msra.mxu0 %v62_v7 }
  0x2b   :  { %215 = vmatprep.subr.mxu0 %v61_v8 }
  0x2c   :  { %216 = vmatpush3.msra.mxu0 %v61_v8 }
  0x2d   :  { %217 = vmatprep.subr.mxu0 %v60_v9 }
  0x2e   :  { %218 = vmatpush3.msra.mxu0 %v60_v9 }
  0x2f   :  { %219 = vmatprep.subr.mxu0 %v59_v10 }
  0x30   :  { %220 = vmatpush3.msra.mxu0 %v59_v10 }
  0x31   :  { %221 = vmatprep.subr.mxu0 %v58_v11 }
  0x32   :  { %222 = vmatpush3.msra.mxu0 %v58_v11 }
  0x33   :  { %223 = vmatprep.subr.mxu0 %v57_v12 }
  0x34   :  { %224 = vmatpush3.msra.mxu0 %v57_v12 }
  0x35   :  { %225 = vmatprep.subr.mxu0 %v56_v13 }
  0x36   :  { %226 = vmatpush3.msra.mxu0 %v56_v13 }
  0x37   :  { %227 = vmatprep.subr.mxu0 %v55_v14 }
  0x38   :  { %228 = vmatpush3.msra.mxu0 %v55_v14 }
  0x39   :  { %229 = vmatprep.subr.mxu0 %v54_v15 }
  0x3a   :  { %230 = vmatpush3.msra.mxu0 %v54_v15 }
  0x3b   :  { %231 = vmatprep.subr.mxu0 %v53_v16 }
  0x3c   :  { %232 = vmatpush3.msra.mxu0 %v53_v16 }
  0x3d   :  { %234 = vmatmul.mubr.f32.vlgmr.msra.gmra.mxu0 %v52_v17 }
  0xfd   :  { %v235_v19 = vpop.f32.mrf.mxu0 }
  0xfe   :  { %v161_v20 = vadd.f32 %v235_v19, %v182_v18 }
  0xff   :  { %v135_v21 = vpop.f32.mrf.mxu0 }
 0x100   :  { %163 = vst [vmem:[#allocation8 + $0x8] sm:$0xff] %v161_v20  ;;  %v160_v22 = vadd.f32 %v182_v18, %v135_v21 }
 0x102   :  { %162 = vst [vmem:[#allocation8] sm:$0xff] %v160_v22 }
 0x103   :  { %292 = shalt.err (!%p289_p0)
}
 0x104   :  { %175 = dma.vmem_to_hbm [thread:$0]  %s170_s25, 256, %s356_s3, [#allocation5], %s308_s15, %s308_s15, %s309_s16  }
 0x105   :  { %305 = dma.done.wait [#allocation5], 256  }
 0x106   :  { %306 = vsyncadd [#allocation5], 4294967040 }
 0x107   :  { %179 = vsyncpa [#allocation4], 1 }
 0x108   :  { %180 = vsyncpa [#allocation7], 1 }
 0x109   :  { %181 = vsyncpa [#allocation5], 1 }

</bundles_post_ra>
